<compile_context>
chip_gen: v6e
topology: v6e:2x2x1
jax: 0.10.0
libtpu: 0.0.40
codegen_flags: <defaults>
</compile_context>

<pallas_src>
import math
import functools

import jax
import jax.numpy as jnp
from jax.experimental import pallas as pl
from jax.experimental.pallas import tpu as pltpu


# ----------------------------------------------------------------------------
# Positional-encoding table (mirrors the torch buffer built in __init__).
# ----------------------------------------------------------------------------
def build_pe_table(d_model: int, max_len: int = 5000, dtype=jnp.float32):
    """Deterministic sin/cos table, shape [max_len, 1, d_model]."""
    position = jnp.arange(max_len, dtype=jnp.float32)[:, None]              # [max_len, 1]
    div_term = jnp.exp(jnp.arange(0, d_model, 2, dtype=jnp.float32)
                       * (-math.log(10000.0) / d_model))                    # [d_model/2]
    pe = jnp.zeros((max_len, d_model), dtype=jnp.float32)
    pe = pe.at[:, 0::2].set(jnp.sin(position * div_term))
    pe = pe.at[:, 1::2].set(jnp.cos(position * div_term))
    return pe[:, None, :].astype(dtype)                                     # [max_len, 1, d_model]


# ----------------------------------------------------------------------------
# Kernels (shape-agnostic: work for both the 2-D lane-dense and 3-D layouts).
# ----------------------------------------------------------------------------
def _pe_kernel(x_ref, pe_ref, o_ref):
    # Pure streaming add; pe broadcasts over batch in the 3-D layout.
    o_ref[...] = (x_ref[...] + pe_ref[...]).astype(o_ref.dtype)


def _pe_dropout_kernel(x_ref, pe_ref, u_ref, o_ref, *, dropout_p: float, scale: float):
    y = x_ref[...] + pe_ref[...]
    keep = u_ref[...] >= jnp.float32(dropout_p)          # keep prob = 1 - p
    # Inverted dropout: constant-scale multiply + select (cheap VPU ops only).
    o_ref[...] = jnp.where(keep, y * jnp.asarray(scale, y.dtype),
                           jnp.zeros_like(y)).astype(o_ref.dtype)


# ----------------------------------------------------------------------------
# Tiling heuristic: ~1 MiB tiles, >= 2 grid steps when possible, 8-row aligned.
# ----------------------------------------------------------------------------
_TARGET_TILE_BYTES = 1 * 1024 * 1024  # keeps double-buffered x/pe/mask/out well
                                      # under the 16 MiB (v5e) / 32 MiB (v6e/v7x)
                                      # scoped-VMEM defaults.


def _pick_tile_s(S: int, row_bytes: int) -> int:
    divisors = [d for d in range(1, S + 1) if S % d == 0]
    # Sublane-friendly candidates (multiple of 8, or the full extent).
    cands = [d for d in divisors if (d % 8 == 0) or (d == S)]
    # Prefer: fits the per-tile byte budget AND leaves >= 2 grid steps so the
    # BlockSpec pipeline can overlap DMA with compute.
    for d in sorted(cands, reverse=True):
        if d * row_bytes <= _TARGET_TILE_BYTES and S // d >= 2:
            return d
    for d in sorted(cands, reverse=True):
        if d * row_bytes <= _TARGET_TILE_BYTES:
            return d
    return min(cands)


# ----------------------------------------------------------------------------
# Forward wrapper.
# ----------------------------------------------------------------------------
def positional_encoding_forward(x, pe_table, *, dropout_p: float = 0.1,
                                training: bool = False, rng_key=None,
                                tile_s=None, donate_x: bool = False):
    """x: [S, B, D] -> [S, B, D]; adds pe_table[:S] and (optionally) dropout."""
    S, B, D = x.shape
    assert pe_table.shape[0] >= S and pe_table.shape[2] == D
    pe_sd = pe_table[:S, 0, :].astype(x.dtype)                               # [S, D]

    dropout_p = float(dropout_p)
    use_dropout = bool(training) and dropout_p > 0.0
    if use_dropout and dropout_p >= 1.0:
        # torch.nn.Dropout(p=1.0) zeroes everything in training mode.
        return jnp.zeros_like(x)
    if use_dropout and rng_key is None:
        raise ValueError("rng_key is required when training with dropout_p > 0")

    lane_dense = (B * D) % 128 == 0
    itemsize = jnp.dtype(x.dtype).itemsize
    row_bytes = B * D * itemsize

    if lane_dense:
        # 2-D lane-dense slabs: last dim is a multiple of 128 -> unmasked vst.
        x_op = x.reshape(S, B * D)
        # pe is broadcast to the full row once in the wrapper; it is 1/B of the
        # x traffic originally and this keeps the kernel layout fully dense.
        pe_op = jnp.broadcast_to(pe_sd[:, None, :], (S, B, D)).reshape(S, B * D)
        make_blk = lambda ts: (ts, B * D)
        idx_map = lambda i: (i, 0)
        pe_blk, pe_idx = make_blk, idx_map
        out_struct = jax.ShapeDtypeStruct((S, B * D), x.dtype)
    else:
        # Fallback 3-D layout; pe stays small ([tile_s, 1, D]) and broadcasts
        # over batch inside the kernel (no extra HBM traffic).
        x_op = x
        pe_op = pe_sd[:, None, :]                                            # [S, 1, D]
        make_blk = lambda ts: (ts, B, D)
        idx_map = lambda i: (i, 0, 0)
        pe_blk = lambda ts: (ts, 1, D)
        pe_idx = idx_map
        out_struct = jax.ShapeDtypeStruct((S, B, D), x.dtype)

    if tile_s is None:
        tile_s = _pick_tile_s(S, row_bytes)
    assert S % tile_s == 0, "tile_s must divide seq_len"
    grid = (S // tile_s,)

    operands = [x_op, pe_op]
    in_specs = [pl.BlockSpec(make_blk(tile_s), idx_map),
                pl.BlockSpec(pe_blk(tile_s), pe_idx)]

    if use_dropout:
        scale = 1.0 / (1.0 - dropout_p)
        u = jax.random.uniform(rng_key, x_op.shape, dtype=jnp.float32)
        operands.append(u)
        in_specs.append(pl.BlockSpec(make_blk(tile_s), idx_map))
        kernel = functools.partial(_pe_dropout_kernel,
                                   dropout_p=dropout_p, scale=scale)
    else:
        kernel = _pe_kernel

    out = pl.pallas_call(
        kernel,
        out_shape=out_struct,
        grid_spec=pltpu.PrefetchScalarGridSpec(
            num_scalar_prefetch=0,
            grid=grid,
            in_specs=in_specs,
            out_specs=pl.BlockSpec(make_blk(tile_s), idx_map),
        ),
        compiler_params=pltpu.CompilerParams(
            # Grid steps are independent -> shard across v7x's two TensorCores.
            dimension_semantics=("parallel",),
        ),
        input_output_aliases=({0: 0} if donate_x else {}),
    )(*operands)

    return out.reshape(S, B, D)


# ----------------------------------------------------------------------------
# Demo / self-check.
# ----------------------------------------------------------------------------
if __name__ == "__main__":
    d_model = 64
    seq_len = 64     # small, but gives a multi-step grid (tile_s=32, 2 steps)
    batch = 2
    max_len = 128    # small synthetic table (module default is 5000)
    dropout_p = 0.1

    key = jax.random.PRNGKey(0)
    kx, kdrop = jax.random.split(key)
    x = jax.random.normal(kx, (seq_len, batch, d_model), dtype=jnp.float32)
    pe_table = build_pe_table(d_model, max_len=max_len)

    # Eval-mode forward (dropout is identity), matching module.eval().
    out = positional_encoding_forward(x, pe_table, dropout_p=dropout_p,
                                      training=False)
    out = jax.block_until_ready(out)

    ref = x + pe_table[:seq_len]
    assert out.shape == (seq_len, batch, d_model)
    assert jnp.allclose(out, ref, atol=1e-6), "eval-mode mismatch vs. reference"

    # Training-mode forward (stochastic inverted dropout).
    out_train = positional_encoding_forward(x, pe_table, dropout_p=dropout_p,
                                            training=True, rng_key=kdrop)
    out_train = jax.block_until_ready(out_train)
    assert out_train.shape == (seq_len, batch, d_model)

    # Kept elements must equal (x + pe) / (1 - p); dropped elements are 0.
    scale = 1.0 / (1.0 - dropout_p)
    kept = out_train != 0.0
    assert jnp.allclose(jnp.where(kept, out_train, 0.0),
                        jnp.where(kept, ref * scale, 0.0), atol=1e-5), \
        "training-mode dropout values mismatch"

    print("KERNEL_OK")
</pallas_src>

<mosaic_0001>
module attributes {stable_mosaic.version = 11 : i64} {
  func.func @_pe_kernel(%arg0: i32, %arg1: memref<32x128xf32, #tpu.memory_space<vmem>>, %arg2: memref<32x128xf32, #tpu.memory_space<vmem>>, %arg3: memref<32x128xf32, #tpu.memory_space<vmem>>) attributes {dimension_semantics = [#tpu.dimension_semantics<parallel>], iteration_bounds = array<i64: 2>, scalar_prefetch = 0 : i64, scratch_operands = 0 : i64, tpu.core_type = #tpu.core_type<tc>, window_params = [{transform_indices = @transform_0, window_bounds = array<i64: 32, 128>}, {transform_indices = @transform_1, window_bounds = array<i64: 32, 128>}, {transform_indices = @transform_2, window_bounds = array<i64: 32, 128>}]} {
    %c0 = arith.constant 0 : index
    %c0_0 = arith.constant 0 : index
    %0 = vector.load %arg1[%c0, %c0_0] : memref<32x128xf32, #tpu.memory_space<vmem>>, vector<32x128xf32>
    %c0_1 = arith.constant 0 : index
    %c0_2 = arith.constant 0 : index
    %1 = vector.load %arg2[%c0_1, %c0_2] : memref<32x128xf32, #tpu.memory_space<vmem>>, vector<32x128xf32>
    %2 = arith.addf %0, %1 : vector<32x128xf32>
    %c0_3 = arith.constant 0 : index
    %c0_4 = arith.constant 0 : index
    %3 = vector.load %arg3[%c0_3, %c0_4] : memref<32x128xf32, #tpu.memory_space<vmem>>, vector<32x128xf32>
    tpu.vector_store %arg3[%c0_3, %c0_4], %2 {strides = array<i32>} : memref<32x128xf32, #tpu.memory_space<vmem>>, vector<32x128xf32>,
    return
  }
  func.func @transform_0(%arg0: i32) -> (i32, i32) {
    %c0_i32 = arith.constant 0 : i32
    %c0_i32_0 = arith.constant 0 : i32
    return %arg0, %c0_i32 : i32, i32
  }
  func.func @transform_1(%arg0: i32) -> (i32, i32) {
    %c0_i32 = arith.constant 0 : i32
    %c0_i32_0 = arith.constant 0 : i32
    return %arg0, %c0_i32 : i32, i32
  }
  func.func @transform_2(%arg0: i32) -> (i32, i32) {
    %c0_i32 = arith.constant 0 : i32
    %c0_i32_0 = arith.constant 0 : i32
    return %arg0, %c0_i32 : i32, i32
  }
}

</mosaic_0001>

<bundles_post_ra>
// kernel: tpu_custom_call.1
= control target key start
LH: loop header
LB: loop body
LE: loop exit
PB: predicated region body
PF: predicated region fallthrough
CT: control target
= control target key end

     0   :  { %7 = vsyncpa [#allocation3], 0  ;;  %s773_s0 = inlined_call_operand.hbm [shape: f32[64,128], index: 0, kind: input, shape index: {}]   ;;  %s774_s1 = inlined_call_operand.hbm [shape: f32[64,128], index: 1, kind: input, shape index: {}]   ;;  %s775_s2 = inlined_call_operand.hbm [shape: f32[64,128], index: 2, kind: output, shape index: {}]  }
   0x1   :  { %9 = vsyncpa [#allocation3 + $0x1], 0 }
   0x2   :  { %10 = vsyncpa [#allocation6], 0 }
   0x3   :  { %12 = vsyncpa [#allocation6 + $0x1], 0 }
   0x4   :  { %13 = vsyncpa [#allocation4], 0 }
   0x5   :  { %15 = vsyncpa [#allocation4 + $0x1], 0  ;;  %s555_s9 = smov 0   ;;  %s557_s10 = smov 0  }
   0x6   :  { %s559_s11 = smov 0   ;;  %s561_s12 = smov 0  }
   0x7 LB: > { %s576_s13 = sadd.s32 4294967295, %s531_s12   ;;  %s331_s14 = sadd.s32 4294967294, %s531_s12   ;;  %s531_s12 = sphi %s561_s12, %s791_s12   ;;  %s527_s11 = sphi %s559_s11, %s790_s11   ;;  %s523_s10 = sphi %s557_s10, %s789_s10   ;;  %s519_s9 = sphi %s555_s9, %s788_s9  }
   0x8   : > { %s580_s15 = sadd.s32 1, %s531_s12   ;;  %s28_s16 = sadd.s32 1, %s527_s11 }
   0x9   : > { %s25_s17 = ssub.s32 %s531_s12, %s580_s15  ;;  %p35_p0 = scmp.ne.s32.totalorder %s527_s11, %s523_s10 }
   0xa   : > { %p26_p1 = scmp.eq.s32.totalorder %s25_s17, 0  ;;  %p36_p2 = scmp.eq.s32.totalorder %s531_s12, 0 }
   0xb   : > { %p41_p3 = scmp.ne.s32.totalorder %s523_s10, %s519_s9  ;;  %p42_p4 = scmp.eq.s32.totalorder %s576_s13, 0 }
   0xc   : > { %s592_s18 = scalar_select %p26_p1, %s527_s11, %s28_s16  }
   0xd   : > { %p594_p5 = por %p36_p2, %p35_p0  ;;  %p598_p6 = por %p42_p4, %p41_p3 }
   0xe   : > { %p91_p7 = scmp.eq.s32.totalorder %s576_s13, 1  ;;  %p97_p8 = scmp.eq.s32.totalorder %s331_s14, 1 }
   0xf   : > { %s779_s20 = scalar_select %p598_p6, 1, 0 }
  0x10   : > { %p369_p10 = scmp.lt.s32.totalorder %s531_s12, 2  ;;  %p605_p11 = por %p91_p7, %p35_p0 }
  0x11   : > { %p609_p12 = por %p97_p8, %p41_p3  ;;  %s614_s23 = sand.u32 1, %s527_s11  }
  0x12   : > { %s780_s21 = scalar_select %p605_p11, 1, 0 }
  0x13   : > { %s781_s22 = scalar_select %p609_p12, 1, 0 }
  0x14   : > { %s349_s24 = sshll.u32 %s531_s12, 9  ;;  %s334_s25 = sshll.u32 %s614_s23, 5 }
  0x15   : > { %s623_s28 = scalar_lea.hbm %s773_s0, %s349_s24  ;;  %s121_s29 = scalar_lea.vmem [#allocation2], %s334_s25 }
  0x16   : > { %s128_s30 = sshll.u32 %s121_s29, 4  ;;  %p629_p13 = pnand %p369_p10, %p594_p5  ;;  %s633_s30 = int_to_ptr.vmem [resolvable:$true] %s128_s30 }
  0x17   : > { %s118_s4 = scalar_lea.sflag [#allocation3], %s614_s23  ;;  %s407_s5 = scalar_lea.hbm %s623_s28, 512 }
  0x18   : > { %p408_p0 = scmp.ne.s32.totalorder %s623_s28, %s407_s5  ;;  %p409_p1 = pneg %p629_p13 }
  0x19   : > { %s412_s8 = scalar_lea.hbm %s773_s0, 1024  ;;  %p413_p4 = scmp.lt.s32.totalorder %s623_s28, %s773_s0 }
  0x1a   : > { %p410_p2 = pnand %p409_p1, %p408_p0  ;;  %p414_p5 = scmp.lt.s32.totalorder %s412_s8, %s407_s5 }
  0x1c   : > { %p411_p3 = pneg %p410_p2  ;;  %p415_p7 = por %p414_p5, %p413_p4 }
  0x1e   : > { %p416_p8 = pnand %p415_p7, %p411_p3 }
  0x20   : > { %419 = shalt.err (!%p416_p8)
}
  0x21   : > { %s420_s17 = scalar_lea.vmem %s633_s30, 512  ;;  %s533_s19 = smov [#allocation2]  }
  0x22   : > { %p421_p10 = scmp.ne.s32.totalorder %s633_s30, %s420_s17  ;;  %s425_s26 = sshll.u32 %s533_s19, 4  ;;  %s426_s26 = int_to_ptr.vmem [resolvable:$false] %s425_s26 }
  0x23   : > { %s427_s27 = scalar_lea.vmem %s426_s26, 1024  ;;  %p428_p9 = scmp.lt.s32.totalorder %s633_s30, %s426_s26 }
  0x24   : > { %p423_p0 = pnand %p421_p10, %p409_p1  ;;  %p429_p12 = scmp.lt.s32.totalorder %s427_s27, %s420_s17 }
  0x26   : > { %p424_p2 = pneg %p423_p0  ;;  %p430_p11 = por %p429_p12, %p428_p9 }
  0x28   : > { %p431_p4 = pnand %p430_p11, %p424_p2 }
  0x2a   : > { %434 = shalt.err (!%p431_p4)
}
  0x2b   : > { %s534_s29 = smov 128   ;;  %s535_s5 = smov 8  }
  0x2c   : > { %361 = dma.hbm_to_vmem [thread:$0]  (!%p629_p13), %s623_s28, 512, %s633_s30, %s118_s4, %s534_s29, %s534_s29, %s535_s5  }
  0x2d   : > { %p340_p9 = scmp.ge.s32.totalorder %s531_s12, 1  ;;  %p157_p11 = scmp.lt.s32.totalorder %s531_s12, 3 }
  0x2e   : > { %s676_s14 = scalar_lea.hbm %s774_s1, %s349_s24  ;;  %s142_s16 = scalar_lea.vmem [#allocation5], %s334_s25 }
  0x2f   : > { %p667_p12 = pnand %p340_p9, %p157_p11  ;;  %s149_s17 = sshll.u32 %s142_s16, 4  ;;  %s680_s17 = int_to_ptr.vmem [resolvable:$true] %s149_s17 }
  0x30   : > { %s139_s28 = scalar_lea.sflag [#allocation6], %s614_s23  ;;  %s435_s30 = scalar_lea.hbm %s676_s14, 512 }
  0x31   : > { %p436_p3 = scmp.ne.s32.totalorder %s676_s14, %s435_s30  ;;  %s440_s24 = scalar_lea.hbm %s774_s1, 1024 }
  0x32   : > { %p441_p8 = scmp.lt.s32.totalorder %s676_s14, %s774_s1  ;;  %p442_p10 = scmp.lt.s32.totalorder %s440_s24, %s435_s30 }
  0x33   : > { %p438_p5 = pnand %p436_p3, %p409_p1 }
  0x34   : > { %p443_p0 = por %p442_p10, %p441_p8 }
  0x35   : > { %p439_p7 = pneg %p438_p5 }
  0x37   : > { %p444_p2 = pnand %p443_p0, %p439_p7 }
  0x39   : > { %447 = shalt.err (!%p444_p2)
}
  0x3a   : > { %s448_s23 = scalar_lea.vmem %s680_s17, 512  ;;  %s536_s25 = smov [#allocation5]  }
  0x3b   : > { %p449_p4 = scmp.ne.s32.totalorder %s680_s17, %s448_s23  ;;  %s453_s7 = sshll.u32 %s536_s25, 4  ;;  %s454_s7 = int_to_ptr.vmem [resolvable:$false] %s453_s7 }
  0x3c   : > { %s455_s8 = scalar_lea.vmem %s454_s7, 1024  ;;  %p456_p3 = scmp.lt.s32.totalorder %s680_s17, %s454_s7 }
  0x3d   : > { %p451_p9 = pnand %p449_p4, %p409_p1  ;;  %p457_p5 = scmp.lt.s32.totalorder %s455_s8, %s448_s23 }
  0x3f   : > { %p452_p11 = pneg %p451_p9  ;;  %p458_p6 = por %p457_p5, %p456_p3 }
  0x41   : > { %p459_p8 = pnand %p458_p6, %p452_p11 }
  0x43   : > { %462 = shalt.err (!%p459_p8)
}
  0x44   : > { %364 = dma.hbm_to_vmem [thread:$0]  (!%p629_p13), %s676_s14, 512, %s680_s17, %s139_s28, %s534_s29, %s534_s29, %s535_s5  }
  0x45   : > { %161 = sbr.rel (%p667_p12) target bundleno = 103 (0x67), region = 28  ;;  %s711_s16 = sand.u32 (!%p667_p12), 1, %s523_s10  }
  0x46   : > { %s341_s30 = sshll.u32 (!%p667_p12), %s711_s16, 5  ;;  %s164_s4 = scalar_lea.sflag (!%p667_p12), [#allocation3], %s711_s16 }
  0x47   : > { %s167_s19 = scalar_lea.vmem (!%p667_p12), [#allocation2], %s341_s30  ;;  %p784_p6 = scmp.ne.s32.totalorder (!%p667_p12), %s779_s20, 0 }
  0x4a   : > { %506 = dma.done.wait (%p784_p6), %s164_s4, 512  }
  0x4b   : > { %508 = vsyncadd (%p784_p6), %s164_s4, 4294966784  ;;  %s173_s3 = scalar_lea.sflag [#allocation6], %s711_s16  ;;  %s176_s29 = scalar_lea.vmem [#allocation5], %s341_s30 }
  0x4c   : > { %510 = dma.done.wait (%p784_p6), %s173_s3, 512  }
  0x4d   : > { %512 = vsyncadd (%p784_p6), %s173_s3, 4294966784  ;;  %s201_s5 = scalar_lea.vmem [#allocation7], %s341_s30  ;;  %s351_s14 = sshll.u32 %s576_s13, 9  ;;  %v205_v0 = vld [vmem:[%s167_s19] sm:$0xff]  ;;  %v206_v2 = vld [vmem:[%s167_s19 + $0x8] sm:$0xff] }
  0x4e   : > { %s235_s6 = sshll.u32 %s201_s5, 4  ;;  %v209_v1 = vld [vmem:[%s176_s29] sm:$0xff]  ;;  %v210_v4 = vld [vmem:[%s176_s29 + $0x8] sm:$0xff]  ;;  %v207_v5 = vld [vmem:[%s167_s19 + $0x10] sm:$0xff]  ;;  %s730_s13 = scalar_lea.hbm %s775_s2, %s351_s14  ;;  %s725_s6 = int_to_ptr.vmem [resolvable:$true] %s235_s6 }
  0x4f   : > { %v213_v3 = vadd.f32 %v209_v1, %v205_v0  ;;  %v211_v6 = vld [vmem:[%s176_s29 + $0x10] sm:$0xff]  ;;  %v214_v7 = vadd.f32 %v210_v4, %v206_v2  ;;  %v208_v9 = vld [vmem:[%s167_s19 + $0x18] sm:$0xff]  ;;  %s222_s28 = scalar_lea.sflag [#allocation4], %s711_s16  ;;  %s463_s24 = scalar_lea.vmem %s725_s6, 512 }
  0x50   : > { %v215_v8 = vadd.f32 %v211_v6, %v207_v5  ;;  %v212_v10 = vld [vmem:[%s176_s29 + $0x18] sm:$0xff]  ;;  %p464_p13 = scmp.ne.s32.totalorder %s725_s6, %s463_s24  ;;  %p785_p1 = scmp.ne.s32.totalorder %s780_s21, 0 }
  0x51   : > { %217 = vst [vmem:[%s201_s5] sm:$0xff] %v213_v3  ;;  %v216_v11 = vadd.f32 %v212_v10, %v208_v9  ;;  %218 = vst [vmem:[%s201_s5 + $0x8] sm:$0xff] %v214_v7  ;;  %s537_s26 = smov [#allocation7]  }
  0x52   : > { %219 = vst [vmem:[%s201_s5 + $0x10] sm:$0xff] %v215_v8  ;;  %p465_p12 = pnand %p464_p13, %p785_p1  ;;  %s467_s27 = sshll.u32 %s537_s26, 4  ;;  %s468_s27 = int_to_ptr.vmem [resolvable:$false] %s467_s27 }
  0x53   : > { %220 = vst [vmem:[%s201_s5 + $0x18] sm:$0xff] %v216_v11  ;;  %s469_s23 = scalar_lea.vmem %s468_s27, 1024  ;;  %p470_p10 = scmp.lt.s32.totalorder %s725_s6, %s468_s27 }
  0x54   : > { %p466_p7 = pneg %p465_p12  ;;  %p471_p0 = scmp.lt.s32.totalorder %s469_s23, %s463_s24 }
  0x56   : > { %p472_p2 = por %p471_p0, %p470_p10 }
  0x58   : > { %p473_p4 = pnand %p472_p2, %p466_p7 }
  0x5a   : > { %476 = shalt.err (!%p473_p4)
}
  0x5b   : > { %s477_s25 = scalar_lea.hbm %s730_s13, 512  ;;  %s481_s30 = scalar_lea.hbm %s775_s2, 1024 }
  0x5c   : > { %p478_p9 = scmp.ne.s32.totalorder %s730_s13, %s477_s25  ;;  %p482_p5 = scmp.lt.s32.totalorder %s730_s13, %s775_s2 }
  0x5d   : > { %p483_p8 = scmp.lt.s32.totalorder %s481_s30, %s477_s25 }
  0x5e   : > { %p479_p11 = pnand %p478_p9, %p785_p1 }
  0x5f   : > { %p484_p6 = por %p483_p8, %p482_p5 }
  0x60   : > { %p480_p3 = pneg %p479_p11 }
  0x62   : > { %p485_p13 = pnand %p484_p6, %p480_p3 }
  0x64   : > { %488 = shalt.err (!%p485_p13)
}
  0x65   : > { %s538_s3 = smov 128   ;;  %s539_s29 = smov 8  }
  0x66   : > { %356 = dma.vmem_to_hbm [thread:$0]  (%p785_p1), %s725_s6, 512, %s730_s13, %s222_s28, %s538_s3, %s538_s3, %s539_s29  }
  0x67 PF: > { %s250_s5 = sand.u32 1, %s519_s9   ;;  %p786_p12 = scmp.ne.s32.totalorder %s781_s22, 0 }
  0x68   : > { %p787_p7 = scmp.ge.s32.totalorder %s531_s12, 2  ;;  %s251_s14 = scalar_lea.sflag [#allocation4], %s250_s5 }
  0x6a   : > { %p366_p10 = pnand %p787_p7, %p786_p12 }
  0x6c   : > { %p367_p0 = pneg %p366_p10 }
  0x6e   : > { %514 = dma.done.wait (%p367_p0), %s251_s14, 512  }
  0x6f   : > { %516 = vsyncadd (%p367_p0), %s251_s14, 4294966784  ;;  %p18_p2 = scmp.ge.s32.totalorder %s580_s15, 4   ;;  %s788_s9 = smov %s523_s10 }
  0x70   : > { %s789_s10 = smov %s527_s11  ;;  %s790_s11 = smov %s592_s18 }
  0x71   : > { %s791_s12 = smov %s580_s15  ;;  %20 = sbr.rel (!%p18_p2) target bundleno = 7 (0x7), region = 86 }
  0x76   :  { %256 = vsyncpa [#allocation3], 1 }
  0x77   :  { %258 = vsyncpa [#allocation3 + $0x1], 1 }
  0x78   :  { %259 = vsyncpa [#allocation6], 1 }
  0x79   :  { %261 = vsyncpa [#allocation6 + $0x1], 1 }
  0x7a   :  { %262 = vsyncpa [#allocation4], 1 }
  0x7b   :  { %264 = vsyncpa [#allocation4 + $0x1], 1 }

</bundles_post_ra>
